<compile_context>
chip_gen: v7x
topology: tpu7x:2x2x1
jax: 0.10.0
libtpu: 0.0.40
codegen_flags: <defaults>
</compile_context>

<pallas_src>
import functools

import jax
import jax.numpy as jnp
from jax.experimental import pallas as pl
from jax.experimental.pallas import tpu as pltpu


def _round_up(x: int, m: int) -> int:
    return ((x + m - 1) // m) * m


def _beta_delta_kernel(w_ref, b_ref, ctx_ref, out_ref):
    # w_ref:   (2, 16)       -- PyTorch nn.Linear.weight layout (out, in)
    # b_ref:   (2, 1)
    # ctx_ref: (16, TILE_B)  -- batch on the 128-lane axis (lane-dense)
    # out_ref: (2, TILE_B)
    h = jnp.dot(w_ref[...], ctx_ref[...], preferred_element_type=jnp.float32)
    h = h + b_ref[...]
    # sigmoid(x) = 0.5 * (tanh(0.5 * x) + 1): single EUP op, numerically stable.
    out_ref[...] = (0.5 * (jnp.tanh(0.5 * h) + 1.0)).astype(out_ref.dtype)


@functools.partial(jax.jit, static_argnames=("tile_b",))
def beta_delta_forward(ctx, weight, bias, *, tile_b: int = 2048):
    """BetaDeltaModel.forward: sigmoid(ctx @ weight.T + bias).

    ctx:    (B, 16) float32
    weight: (2, 16) float32   -- same layout as torch nn.Linear.weight
    bias:   (2,)    float32
    returns (B, 2)  float32
    """
    B, in_f = ctx.shape
    out_f = weight.shape[0]

    # Batch tile: multiple of 128 (lane width); shrink for tiny batches so the
    # demo doesn't pad excessively, cap at `tile_b` for large stacked batches.
    tb = min(tile_b, max(128, _round_up(B, 128)))
    tb = _round_up(tb, 128)
    b_pad = _round_up(B, tb)

    # Lane-dense layout: transpose so batch is the last (lane) axis, pad to a
    # whole number of tiles.
    ctx_t = jnp.pad(ctx.T, ((0, 0), (0, b_pad - B)))          # (16, B_pad)
    bias2 = bias.reshape(out_f, 1)                            # (2, 1)

    grid = (pl.cdiv(b_pad, tb),)
    out_t = pl.pallas_call(
        _beta_delta_kernel,
        out_shape=jax.ShapeDtypeStruct((out_f, b_pad), jnp.float32),
        grid=grid,
        in_specs=[
            pl.BlockSpec((out_f, in_f), lambda i: (0, 0)),     # W: VMEM-resident
            pl.BlockSpec((out_f, 1), lambda i: (0, 0)),        # bias: VMEM-resident
            pl.BlockSpec((in_f, tb), lambda i: (0, i)),        # ctx: streamed tiles
            # TODO(synk): add pipeline_mode=pl.Buffered(3) on the ctx spec if a
            # trace shows exposed DMA (wall >> compute) at large batch sizes.
        ],
        out_specs=pl.BlockSpec((out_f, tb), lambda i: (0, i)),
        compiler_params=pltpu.CompilerParams(
            dimension_semantics=("parallel",),   # shard batch tiles across v7x's 2 TCs
        ),
    )(weight, bias2, ctx_t)

    return out_t.T[:B, :]                                      # (B, 2)


if __name__ == "__main__":
    in_features, out_features = 16, 2
    B = 8  # small batch of context rows

    key = jax.random.PRNGKey(0)
    k_w, k_b, k_ctx = jax.random.split(key, 3)

    # Deterministic PyTorch-style nn.Linear init (weight in torch layout).
    bound = 1.0 / jnp.sqrt(float(in_features))
    weight = jax.random.uniform(
        k_w, (out_features, in_features), jnp.float32, -bound, bound)
    bias = jax.random.uniform(k_b, (out_features,), jnp.float32, -bound, bound)
    ctx = jax.random.normal(k_ctx, (B, in_features), jnp.float32)

    out = beta_delta_forward(ctx, weight, bias)
    out = jax.block_until_ready(out)

    # Pure-JAX reference of the forward semantics.
    ref = jax.nn.sigmoid(ctx @ weight.T + bias)
    assert out.shape == (B, out_features), out.shape
    assert bool(jnp.all(jnp.isfinite(out)))
    assert bool(jnp.allclose(out, ref, atol=2e-6, rtol=2e-6))
    print("KERNEL_OK")
</pallas_src>

<mosaic_0001>
module attributes {stable_mosaic.version = 11 : i64} {
  func.func @_beta_delta_kernel(%arg0: i32, %arg1: memref<2x16xf32, #tpu.memory_space<vmem>>, %arg2: memref<2x1xf32, #tpu.memory_space<vmem>>, %arg3: memref<16x128xf32, #tpu.memory_space<vmem>>, %arg4: memref<2x128xf32, #tpu.memory_space<vmem>>) attributes {dimension_semantics = [#tpu.dimension_semantics<parallel>], iteration_bounds = array<i64: 1>, scalar_prefetch = 0 : i64, scratch_operands = 0 : i64, tpu.core_type = #tpu.core_type<tc>, window_params = [{pipeline_mode = #tpu.pipeline_mode<synchronous>, transform_indices = @transform_0, window_bounds = array<i64: 2, 16>}, {pipeline_mode = #tpu.pipeline_mode<synchronous>, transform_indices = @transform_1, window_bounds = array<i64: 2, 1>}, {transform_indices = @transform_2, window_bounds = array<i64: 16, 128>}, {transform_indices = @transform_3, window_bounds = array<i64: 2, 128>}]} {
    %c0 = arith.constant 0 : index
    %c0_0 = arith.constant 0 : index
    %0 = vector.load %arg1[%c0, %c0_0] : memref<2x16xf32, #tpu.memory_space<vmem>>, vector<2x16xf32>
    %c0_1 = arith.constant 0 : index
    %c0_2 = arith.constant 0 : index
    %1 = vector.load %arg3[%c0_1, %c0_2] : memref<16x128xf32, #tpu.memory_space<vmem>>, vector<16x128xf32>
    %cst = arith.constant dense<0.000000e+00> : vector<2x128xf32>
    %2 = tpu.matmul %0, %1, %cst {dimension_numbers = #tpu.dot_dimension_numbers<[1], [0], [0], [1], [0, 0, 1, 1], [], []>} : vector<2x16xf32>, vector<16x128xf32>, vector<2x128xf32> -> vector<2x128xf32>
    %c0_3 = arith.constant 0 : index
    %c0_4 = arith.constant 0 : index
    %3 = vector.load %arg2[%c0_3, %c0_4] : memref<2x1xf32, #tpu.memory_space<vmem>>, vector<2x1xf32>
    %4 = vector.broadcast %3 : vector<2x1xf32> to vector<2x128xf32>
    %5 = arith.addf %2, %4 : vector<2x128xf32>
    %cst_5 = arith.constant 5.000000e-01 : f32
    %6 = vector.broadcast %cst_5 : f32 to vector<2x128xf32>
    %7 = arith.mulf %6, %5 : vector<2x128xf32>
    %8 = math.tanh %7 : vector<2x128xf32>
    %cst_6 = arith.constant 1.000000e+00 : f32
    %9 = vector.broadcast %cst_6 : f32 to vector<2x128xf32>
    %10 = arith.addf %8, %9 : vector<2x128xf32>
    %cst_7 = arith.constant 5.000000e-01 : f32
    %11 = vector.broadcast %cst_7 : f32 to vector<2x128xf32>
    %12 = arith.mulf %11, %10 : vector<2x128xf32>
    %c0_8 = arith.constant 0 : index
    %c0_9 = arith.constant 0 : index
    %13 = vector.load %arg4[%c0_8, %c0_9] : memref<2x128xf32, #tpu.memory_space<vmem>>, vector<2x128xf32>
    tpu.vector_store %arg4[%c0_8, %c0_9], %12 {strides = array<i32>} : memref<2x128xf32, #tpu.memory_space<vmem>>, vector<2x128xf32>,
    return
  }
  func.func @transform_0(%arg0: i32) -> (i32, i32) {
    %c0_i32 = arith.constant 0 : i32
    %c0_i32_0 = arith.constant 0 : i32
    %c0_i32_1 = arith.constant 0 : i32
    return %c0_i32, %c0_i32_0 : i32, i32
  }
  func.func @transform_1(%arg0: i32) -> (i32, i32) {
    %c0_i32 = arith.constant 0 : i32
    %c0_i32_0 = arith.constant 0 : i32
    %c0_i32_1 = arith.constant 0 : i32
    return %c0_i32, %c0_i32_0 : i32, i32
  }
  func.func @transform_2(%arg0: i32) -> (i32, i32) {
    %c0_i32 = arith.constant 0 : i32
    %c0_i32_0 = arith.constant 0 : i32
    return %c0_i32, %arg0 : i32, i32
  }
  func.func @transform_3(%arg0: i32) -> (i32, i32) {
    %c0_i32 = arith.constant 0 : i32
    %c0_i32_0 = arith.constant 0 : i32
    return %c0_i32, %arg0 : i32, i32
  }
}

</mosaic_0001>

<bundles_post_ra>
// kernel: beta_delta_forward.1
= control target key start
LH: loop header
LB: loop body
LE: loop exit
PB: predicated region body
PF: predicated region fallthrough
CT: control target
= control target key end

     0   :  { %v163_v2 = vmov 0.0|0.0   ;;  %vm164_vm0 = vmmov 0   ;;  %v165_v4 = vmov 0.0   ;;  %v166_v6 = vmov 0   ;;  %s212_s0 = inlined_call_operand.vmem [shape: f32[2,16], index: 0, kind: input, shape index: {}]   ;;  %s213_s1 = inlined_call_operand.vmem [shape: f32[2,1], index: 1, kind: input, shape index: {}]   ;;  %s214_s2 = inlined_call_operand.vmem [shape: f32[16,128], index: 2, kind: input, shape index: {}]   ;;  %s215_s3 = inlined_call_operand.hbm [shape: f32[2,128], index: 3, kind: output, shape index: {}]  }
   0x1   :  { %v16_v0 = vld [vmem:[%s214_s2] sm:$0xff]  ;;  %v17_v1 = vld [vmem:[%s214_s2 + $0x8] sm:$0xff]  ;;  %128 = vmatprep.subr.bf16.mxu0 %v163_v2  ;;  %125 = vmatprep.mubr.msk.f32.mxu0 %vm164_vm0, %v165_v4 }
   0x2   :  { %v129_v3 = vpack.c.bf16 %v17_v1, %v16_v0  ;;  %v18_v5 = vld [vmem:[%s213_s1] sm:$0x3]  ;;  %136 = vset.pattern.permute.xlu0 %v166_v6 }
   0x3   :  { %8 = vsyncpa [#allocation3], 0  ;;  %v15_v7 = vld [vmem:[%s212_s0] sm:$0x3]  ;;  %vm24_vm1 = vcmask 130048   ;;  %21 = vperm.xlu0 %136, %v18_v5   ;;  %s167_s2 = smov [#allocation2]  }
   0x4   :  { %130 = vmatpush3.bf16.msra.mxu0 %v129_v3  ;;  %s109_s1 = sshll.u32 %s167_s2, 4  ;;  %s110_s1 = int_to_ptr.vmem [resolvable:$true] %s109_s1 }
   0x5   :  { %s139_s20 = scalar_lea.vmem %s110_s1, 32  ;;  %p144_p1 = scmp.lt.s32.totalorder %s110_s1, %s110_s1 }
   0x6   :  { %p140_p0 = scmp.ne.s32.totalorder %s110_s1, %s139_s20  ;;  %p145_p2 = scmp.lt.s32.totalorder %s139_s20, %s139_s20 }
   0x7   :  { %126 = vmatmul.mubr.msk.f32.vlgmr.msra.gmra.mrb[0].mxu0 %vm24_vm1, %v15_v7 }
   0x8   :  { %p146_p3 = por %p145_p2, %p144_p1 }
   0xa   :  { %p147_p4 = pnand %p146_p3, %p140_p0 }
  0x82   :  { %v22_v8 = vpop.permute.xlu0 %21 }
  0xda   :  { %v94_v9 = vpop.f32.mrb[0].mxu0 }
  0xdb   :  { %v95_v10 = vadd.f32 %v94_v9, %v22_v8  ;;  %v127_v11 = vpop.f32.mrb[1].mxu0 }
  0xdd   :  { %v98_v12 = vmul.f32 0.5, %v95_v10 }
  0xdf   :  { %137 = vtanh.f32 %v98_v12 }
  0xe9   :  { %v138_v13 = vpop.eup %137 }
  0xea   :  { %v100_v14 = vadd.f32 1.0, %v138_v13 }
  0xec   :  { %v101_v15 = vmul.f32 0.5, %v100_v14 }
  0xee   :  { %102 = vst [vmem:[#allocation2] sm:$0x3] %v101_v15 }
  0xef   :  { %150 = shalt.err (!%p147_p4)
}
  0xf0   :  { %s151_s22 = scalar_lea.hbm %s215_s3, 32 }
  0xf1   :  { %p152_p5 = scmp.ne.s32.totalorder %s215_s3, %s151_s22  ;;  %p155_p6 = scmp.lt.u32.totalorder %s151_s22, %s215_s3 }
  0xf3   :  { %p157_p7 = pnand %p155_p6, %p152_p5 }
  0xf5   :  { %160 = shalt.err (!%p157_p7)
}
  0xf6   :  { %112 = dma.vmem_to_hbm [thread:$0]  %s110_s1, 32, %s215_s3, [#allocation3]  }
  0xf7   :  { %161 = dma.done.wait [#allocation3], 32  }
  0xf8   :  { %162 = vsyncadd [#allocation3], 4294967264 }
  0xf9   :  { %116 = vsyncpa [#allocation3], 1 }

</bundles_post_ra>
